<compile_context>
chip_gen: v5e
topology: v5e:2x2
jax: 0.10.0
libtpu: 0.0.40
codegen_flags: <defaults>
</compile_context>

<pallas_src>
import functools

import jax
import jax.numpy as jnp
from jax import lax
from jax.experimental import pallas as pl
from jax.experimental.pallas import tpu as pltpu

WEIGHT = (0.03, 0.07, 0.2, 0.35, 0.35)
GAMMA = 2          # the PyTorch forward hardcodes exponent 2
EPS = 1e-7


def _focal_loss_kernel(preds_ref, labels_ref, w_ref, out_ref, acc_ref, *,
                       n_rows, block_rows, gamma, eps, denom):
    i = pl.program_id(0)

    @pl.when(i == 0)
    def _():
        acc_ref[...] = jnp.zeros_like(acc_ref)

    x = preds_ref[...].astype(jnp.float32)         # (C, BR)  classes on sublanes
    lbl = labels_ref[...]                          # (1, BR)  int32
    w = w_ref[...].astype(jnp.float32)             # (C, 1)
    C, BR = x.shape

    # one-hot along the (sublane) class axis
    cls = lax.broadcasted_iota(jnp.int32, (C, BR), 0)
    onehot = cls == lbl                            # (C, BR) bool

    # softmax probability of the true class only (EUP: C exps + 1 log per row)
    m = jnp.max(x, axis=0, keepdims=True)          # (1, BR)
    e = jnp.exp(x - m)                             # (C, BR)
    s = jnp.sum(e, axis=0, keepdims=True)          # (1, BR)
    e_true = jnp.sum(jnp.where(onehot, e, 0.0), axis=0, keepdims=True)
    w_true = jnp.sum(jnp.where(onehot, w, 0.0), axis=0, keepdims=True)
    p_true = e_true / s                            # (1, BR), in (0, 1]

    # focal modulation (1 - p)**gamma: integer gamma unrolled into VPU muls
    omp = 1.0 - p_true
    focal = jnp.ones_like(omp)
    for _ in range(gamma):
        focal = focal * omp

    loss_row = w_true * focal * (-jnp.log(p_true + eps))   # (1, BR)

    # mask rows past the true batch size (wrapper pads N up to block multiple)
    row = lax.broadcasted_iota(jnp.int32, (1, BR), 1) + i * block_rows
    loss_row = jnp.where(row < n_rows, loss_row, 0.0)

    acc_ref[...] += loss_row                       # elementwise VPU accumulation

    @pl.when(i == pl.num_programs(0) - 1)
    def _():
        out_ref[...] = (jnp.sum(acc_ref[...], keepdims=True)
                        / jnp.float32(denom))


def focal_loss(preds, labels, weight=WEIGHT, gamma=GAMMA, reduction="mean",
               eps=EPS, block_rows=8192):
    """preds: (N, C) logits; labels: (N,) int class ids. Returns scalar loss."""
    n, c = preds.shape
    assert labels.shape == (n,)

    # Lane-dense layout: classes on sublanes, batch on lanes.
    preds_t = jnp.transpose(preds)                         # (C, N)
    labels2 = labels.astype(jnp.int32).reshape(1, n)       # (1, N)
    w = jnp.asarray(weight, dtype=jnp.float32).reshape(c, 1)

    # Clamp / align the lane-block size.
    block_rows = 128 * pl.cdiv(int(block_rows), 128)
    block_rows = min(block_rows, 128 * pl.cdiv(n, 128))
    block_rows = max(block_rows, 128)

    # Pad batch up to a multiple of block_rows (padded rows masked in-kernel).
    n_pad = block_rows * pl.cdiv(n, block_rows)
    if n_pad != n:
        preds_t = jnp.pad(preds_t, ((0, 0), (0, n_pad - n)))
        labels2 = jnp.pad(labels2, ((0, 0), (0, n_pad - n)))

    denom = float(n) if reduction == "mean" else 1.0
    kernel = functools.partial(
        _focal_loss_kernel, n_rows=n, block_rows=block_rows,
        gamma=int(gamma), eps=float(eps), denom=denom)

    out = pl.pallas_call(
        kernel,
        out_shape=jax.ShapeDtypeStruct((1, 1), jnp.float32),
        grid_spec=pltpu.PrefetchScalarGridSpec(
            num_scalar_prefetch=0,
            grid=(n_pad // block_rows,),
            in_specs=[
                pl.BlockSpec((c, block_rows), lambda i: (0, i)),   # preds^T
                pl.BlockSpec((1, block_rows), lambda i: (0, i)),   # labels
                pl.BlockSpec((c, 1), lambda i: (0, 0)),            # class weights
            ],
            out_specs=pl.BlockSpec((1, 1), lambda i: (0, 0)),
            scratch_shapes=[pltpu.VMEM((1, block_rows), jnp.float32)],
        ),
        compiler_params=pltpu.CompilerParams(
            dimension_semantics=("arbitrary",)),
    )(preds_t, labels2, w)
    return out[0, 0]


def _reference(preds, labels, weight, gamma=GAMMA, eps=EPS, reduction="mean"):
    p = jax.nn.softmax(preds.astype(jnp.float32), axis=1)
    target = jax.nn.one_hot(labels, preds.shape[1], dtype=jnp.float32)
    ce = -jnp.log(p + eps) * target
    floss = (1.0 - p) ** gamma * ce * weight[None, :]
    floss = jnp.sum(floss, axis=1)
    return jnp.mean(floss) if reduction == "mean" else jnp.sum(floss)


if __name__ == "__main__":
    key = jax.random.PRNGKey(0)
    k1, k2 = jax.random.split(key)

    N, C = 2500, 5   # small 5-class batch; non-multiple of block to exercise masking
    preds = 2.0 * jax.random.normal(k1, (N, C), dtype=jnp.float32)
    labels = jax.random.randint(k2, (N,), 0, C, dtype=jnp.int32)

    # block_rows=512 so the demo runs a multi-step grid (init/accum/finalize path).
    loss = focal_loss(preds, labels, block_rows=512)
    loss = jax.block_until_ready(loss)

    w = jnp.asarray(WEIGHT, dtype=jnp.float32)
    ref = jax.block_until_ready(_reference(preds, labels, w))
    assert jnp.allclose(loss, ref, rtol=1e-5, atol=1e-6), (loss, ref)

    print("KERNEL_OK")
</pallas_src>

<mosaic_0001>
module attributes {stable_mosaic.version = 11 : i64} {
  func.func @_focal_loss_kernel(%arg0: i32, %arg1: memref<5x512xf32, #tpu.memory_space<vmem>>, %arg2: memref<1x512xi32, #tpu.memory_space<vmem>>, %arg3: memref<5x1xf32, #tpu.memory_space<vmem>>, %arg4: memref<1x1xf32, #tpu.memory_space<vmem>>, %arg5: memref<1x512xf32, #tpu.memory_space<vmem>>) attributes {dimension_semantics = [#tpu.dimension_semantics<arbitrary>], iteration_bounds = array<i64: 5>, scalar_prefetch = 0 : i64, scratch_operands = 1 : i64, tpu.core_type = #tpu.core_type<tc>, window_params = [{transform_indices = @transform_0, window_bounds = array<i64: 5, 512>}, {transform_indices = @transform_1, window_bounds = array<i64: 1, 512>}, {pipeline_mode = #tpu.pipeline_mode<synchronous>, transform_indices = @transform_2, window_bounds = array<i64: 5, 1>}, {pipeline_mode = #tpu.pipeline_mode<synchronous>, transform_indices = @transform_3, window_bounds = array<i64: 1, 1>}]} {
    %c0_i32 = arith.constant 0 : i32
    %0 = arith.cmpi eq, %arg0, %c0_i32 : i32
    %1 = arith.extui %0 : i1 to i32
    %c0_i32_0 = arith.constant 0 : i32
    %2 = arith.cmpi ne, %1, %c0_i32_0 : i32
    scf.if %2 {
      %cst_21 = arith.constant 0.000000e+00 : f32
      %53 = vector.broadcast %cst_21 : f32 to vector<1x512xf32>
      %c0_22 = arith.constant 0 : index
      %c0_23 = arith.constant 0 : index
      %54 = vector.load %arg5[%c0_22, %c0_23] : memref<1x512xf32, #tpu.memory_space<vmem>>, vector<1x512xf32>
      tpu.vector_store %arg5[%c0_22, %c0_23], %53 {strides = array<i32>} : memref<1x512xf32, #tpu.memory_space<vmem>>, vector<1x512xf32>,
    } else {
    }
    %c0 = arith.constant 0 : index
    %c0_1 = arith.constant 0 : index
    %3 = vector.load %arg1[%c0, %c0_1] : memref<5x512xf32, #tpu.memory_space<vmem>>, vector<5x512xf32>
    %c0_2 = arith.constant 0 : index
    %c0_3 = arith.constant 0 : index
    %4 = vector.load %arg2[%c0_2, %c0_3] : memref<1x512xi32, #tpu.memory_space<vmem>>, vector<1x512xi32>
    %c0_4 = arith.constant 0 : index
    %c0_5 = arith.constant 0 : index
    %5 = vector.load %arg3[%c0_4, %c0_5] : memref<5x1xf32, #tpu.memory_space<vmem>>, vector<5x1xf32>
    %6 = tpu.iota {dimensions = array<i32: 0>} : vector<5x512xi32>
    %7 = vector.broadcast %4 : vector<1x512xi32> to vector<5x512xi32>
    %8 = arith.cmpi eq, %6, %7 : vector<5x512xi32>
    %cst = arith.constant dense<0xFF800000> : vector<512xf32>
    %9 = vector.multi_reduction <maximumf>, %3, %cst [0] : vector<5x512xf32> to vector<512xf32>
    %10 = vector.shape_cast %9 : vector<512xf32> to vector<1x512xf32>
    %11 = vector.broadcast %10 : vector<1x512xf32> to vector<5x512xf32>
    %12 = arith.subf %3, %11 : vector<5x512xf32>
    %13 = math.exp %12 : vector<5x512xf32>
    %cst_6 = arith.constant dense<0.000000e+00> : vector<512xf32>
    %14 = vector.multi_reduction <add>, %13, %cst_6 [0] : vector<5x512xf32> to vector<512xf32>
    %15 = vector.shape_cast %14 : vector<512xf32> to vector<1x512xf32>
    %cst_7 = arith.constant 0.000000e+00 : f32
    %16 = vector.broadcast %cst_7 : f32 to vector<5x512xf32>
    %17 = arith.select %8, %13, %16 : vector<5x512xi1>, vector<5x512xf32>
    %cst_8 = arith.constant dense<0.000000e+00> : vector<512xf32>
    %18 = vector.multi_reduction <add>, %17, %cst_8 [0] : vector<5x512xf32> to vector<512xf32>
    %19 = vector.shape_cast %18 : vector<512xf32> to vector<1x512xf32>
    %cst_9 = arith.constant 0.000000e+00 : f32
    %20 = vector.shape_cast %5 : vector<5x1xf32> to vector<5x1xf32>
    %21 = vector.broadcast %20 : vector<5x1xf32> to vector<5x512xf32>
    %22 = vector.broadcast %cst_9 : f32 to vector<5x512xf32>
    %23 = arith.select %8, %21, %22 : vector<5x512xi1>, vector<5x512xf32>
    %cst_10 = arith.constant dense<0.000000e+00> : vector<512xf32>
    %24 = vector.multi_reduction <add>, %23, %cst_10 [0] : vector<5x512xf32> to vector<512xf32>
    %25 = vector.shape_cast %24 : vector<512xf32> to vector<1x512xf32>
    %26 = arith.divf %19, %15 : vector<1x512xf32>
    %cst_11 = arith.constant 1.000000e+00 : f32
    %27 = vector.broadcast %cst_11 : f32 to vector<1x512xf32>
    %28 = arith.subf %27, %26 : vector<1x512xf32>
    %cst_12 = arith.constant 1.000000e+00 : f32
    %29 = vector.broadcast %cst_12 : f32 to vector<1x512xf32>
    %30 = arith.mulf %29, %28 : vector<1x512xf32>
    %31 = arith.mulf %30, %28 : vector<1x512xf32>
    %32 = arith.mulf %25, %31 : vector<1x512xf32>
    %cst_13 = arith.constant 1.000000e-07 : f32
    %33 = vector.broadcast %cst_13 : f32 to vector<1x512xf32>
    %34 = arith.addf %26, %33 : vector<1x512xf32>
    %35 = math.log %34 : vector<1x512xf32>
    %cst_14 = arith.constant 0.000000e+00 : f32
    %36 = vector.broadcast %cst_14 : f32 to vector<1x512xf32>
    %37 = arith.subf %36, %35 : vector<1x512xf32>
    %38 = arith.mulf %32, %37 : vector<1x512xf32>
    %39 = tpu.iota {dimensions = array<i32: 1>} : vector<1x512xi32>
    %c512_i32 = arith.constant 512 : i32
    %40 = arith.muli %arg0, %c512_i32 : i32
    %41 = vector.broadcast %40 : i32 to vector<1x512xi32>
    %42 = arith.addi %39, %41 : vector<1x512xi32>
    %c2500_i32 = arith.constant 2500 : i32
    %43 = vector.broadcast %c2500_i32 : i32 to vector<1x512xi32>
    %44 = arith.cmpi slt, %42, %43 : vector<1x512xi32>
    %cst_15 = arith.constant 0.000000e+00 : f32
    %45 = vector.broadcast %cst_15 : f32 to vector<1x512xf32>
    %46 = arith.select %44, %38, %45 : vector<1x512xi1>, vector<1x512xf32>
    %c0_16 = arith.constant 0 : index
    %c0_17 = arith.constant 0 : index
    %47 = vector.load %arg5[%c0_16, %c0_17] : memref<1x512xf32, #tpu.memory_space<vmem>>, vector<1x512xf32>
    %48 = arith.addf %47, %46 : vector<1x512xf32>
    %c0_18 = arith.constant 0 : index
    %c0_19 = arith.constant 0 : index
    %49 = vector.load %arg5[%c0_18, %c0_19] : memref<1x512xf32, #tpu.memory_space<vmem>>, vector<1x512xf32>
    tpu.vector_store %arg5[%c0_18, %c0_19], %48 {strides = array<i32>} : memref<1x512xf32, #tpu.memory_space<vmem>>, vector<1x512xf32>,
    %c4_i32 = arith.constant 4 : i32
    %50 = arith.cmpi eq, %arg0, %c4_i32 : i32
    %51 = arith.extui %50 : i1 to i32
    %c0_i32_20 = arith.constant 0 : i32
    %52 = arith.cmpi ne, %51, %c0_i32_20 : i32
    scf.if %52 {
      %c0_21 = arith.constant 0 : index
      %c0_22 = arith.constant 0 : index
      %53 = vector.load %arg5[%c0_21, %c0_22] : memref<1x512xf32, #tpu.memory_space<vmem>>, vector<1x512xf32>
      %54 = vector.shape_cast %53 : vector<1x512xf32> to vector<1x1x512xf32>
      %cst_23 = arith.constant dense<0.000000e+00> : vector<1xf32>
      %55 = vector.multi_reduction <add>, %54, %cst_23 [1, 2] : vector<1x1x512xf32> to vector<1xf32>
      %56 = vector.shape_cast %55 : vector<1xf32> to vector<1x1x1xf32>
      %57 = vector.extract %56[0, 0, 0] : f32 from vector<1x1x1xf32>
      %58 = vector.broadcast %57 : f32 to vector<1x1xf32>
      %cst_24 = arith.constant 2.500000e+03 : f32
      %59 = vector.broadcast %cst_24 : f32 to vector<1x1xf32>
      %60 = arith.divf %58, %59 : vector<1x1xf32>
      %c0_25 = arith.constant 0 : index
      %c0_26 = arith.constant 0 : index
      %61 = vector.load %arg4[%c0_25, %c0_26] : memref<1x1xf32, #tpu.memory_space<vmem>>, vector<1x1xf32>
      tpu.vector_store %arg4[%c0_25, %c0_26], %60 {strides = array<i32>} : memref<1x1xf32, #tpu.memory_space<vmem>>, vector<1x1xf32>,
    } else {
    }
    return
  }
  func.func @transform_0(%arg0: i32) -> (i32, i32) {
    %c0_i32 = arith.constant 0 : i32
    %c0_i32_0 = arith.constant 0 : i32
    return %c0_i32, %arg0 : i32, i32
  }
  func.func @transform_1(%arg0: i32) -> (i32, i32) {
    %c0_i32 = arith.constant 0 : i32
    %c0_i32_0 = arith.constant 0 : i32
    return %c0_i32, %arg0 : i32, i32
  }
  func.func @transform_2(%arg0: i32) -> (i32, i32) {
    %c0_i32 = arith.constant 0 : i32
    %c0_i32_0 = arith.constant 0 : i32
    %c0_i32_1 = arith.constant 0 : i32
    return %c0_i32, %c0_i32_0 : i32, i32
  }
  func.func @transform_3(%arg0: i32) -> (i32, i32) {
    %c0_i32 = arith.constant 0 : i32
    %c0_i32_0 = arith.constant 0 : i32
    %c0_i32_1 = arith.constant 0 : i32
    return %c0_i32, %c0_i32_0 : i32, i32
  }
}

</mosaic_0001>

<bundles_post_ra>
// kernel: tpu_custom_call.1
= control target key start
LH: loop header
LB: loop body
LE: loop exit
PB: predicated region body
PF: predicated region fallthrough
CT: control target
= control target key end

     0   :  { %8 = vsyncpa [#allocation4], 0  ;;  %s1172_s0 = inlined_call_operand.hbm [shape: f32[5,2560], index: 0, kind: input, shape index: {}]   ;;  %s1173_s1 = inlined_call_operand.hbm [shape: s32[1,2560], index: 1, kind: input, shape index: {}]   ;;  %s1174_s2 = inlined_call_operand.vmem [shape: f32[5,1], index: 2, kind: input, shape index: {}]   ;;  %s1175_s3 = inlined_call_operand.hbm [shape: f32[1,1], index: 3, kind: output, shape index: {}]  }
   0x1   :  { %10 = vsyncpa [#allocation4 + $0x1], 0 }
   0x2   :  { %11 = vsyncpa [#allocation7], 0 }
   0x3   :  { %13 = vsyncpa [#allocation7 + $0x1], 0 }
   0x4   :  { %14 = vsyncpa [#allocation5], 0  ;;  %s894_s12 = smov 0   ;;  %s896_s13 = smov 0  }
   0x5   :  { %s898_s14 = smov 0   ;;  %s900_s15 = smov 0  }
   0x6 LB: > { %s913_s16 = sadd.s32 4294967295, %s868_s15   ;;  %s916_s17 = sadd.s32 1, %s868_s15   ;;  %s868_s15 = sphi %s900_s15, %s1199_s15   ;;  %s864_s14 = sphi %s898_s14, %s1198_s14   ;;  %s860_s13 = sphi %s896_s13, %s1197_s13   ;;  %s856_s12 = sphi %s894_s12, %s1196_s12  }
   0x7   : > { %s24_s18 = ssub.s32 %s868_s15, %s916_s17  ;;  %s27_s19 = sadd.s32 1, %s864_s14 }
   0x8   : > { %p25_p0 = scmp.eq.s32.totalorder %s24_s18, 0  ;;  %p34_p1 = scmp.ne.s32.totalorder %s864_s14, %s860_s13 }
   0x9   : > { %p35_p2 = scmp.eq.s32.totalorder %s868_s15, 0  ;;  %p40_p3 = scmp.ne.s32.totalorder %s860_s13, %s856_s12 }
   0xa   : > { %s926_s20 = scalar_select %p25_p0, %s864_s14, %s27_s19  }
   0xb   : > { %p928_p4 = por %p35_p2, %p34_p1  ;;  %p41_p5 = scmp.eq.s32.totalorder %s913_s16, 0 }
   0xc   : > { %p672_p6 = scmp.lt.s32.totalorder %s868_s15, 5  ;;  %s939_s23 = sand.u32 1, %s864_s14  }
   0xd   : > { %p934_p7 = por %p41_p5, %p40_p3  ;;  %s639_s24 = sshll.u32 %s939_s23, 5 }
   0xe   : > { %s654_s25 = sshll.u32 %s868_s15, 5  ;;  %s139_s29 = scalar_lea.vmem [#allocation3], %s639_s24 }
   0xf   : > { %s144_s28 = scalar_lea.hbm %s1172_s0, %s654_s25  ;;  %s148_s30 = sshll.u32 %s139_s29, 4  ;;  %s149_s30 = int_to_ptr.vmem [resolvable:$true] %s148_s30 }
  0x10   : > { %s146_s4 = sshll.u32 %s144_s28, 4  ;;  %p948_p8 = pnand %p672_p6, %p928_p4  ;;  %s147_s4 = int_to_ptr.hbm [resolvable:$true] %s146_s4 }
  0x11   : > { %p644_p9 = scmp.ge.s32.totalorder %s868_s15, 1  ;;  %p172_p10 = scmp.lt.s32.totalorder %s868_s15, 6 }
  0x12   : > { %s136_s6 = scalar_lea.sflag [#allocation4], %s939_s23  ;;  %s738_s7 = sshra.s32 %s147_s4, 4  ;;  %s739_s7 = int_to_ptr.hbm [resolvable:$true] %s738_s7 }
  0x13   : > { %s740_s8 = scalar_lea.hbm %s739_s7, 32  ;;  %p742_p12 = pneg %p948_p8 }
  0x14   : > { %p741_p11 = scmp.ne.s32.totalorder %s739_s7, %s740_s8  ;;  %s745_s11 = scalar_lea.hbm %s1172_s0, 160 }
  0x15   : > { %p746_p1 = scmp.lt.s32.totalorder %s739_s7, %s1172_s0  ;;  %p747_p2 = scmp.lt.s32.totalorder %s745_s11, %s740_s8 }
  0x16   : > { %p743_p13 = pnand %p742_p12, %p741_p11 }
  0x17   : > { %p748_p3 = por %p747_p2, %p746_p1 }
  0x18   : > { %p744_p0 = pneg %p743_p13 }
  0x1a   : > { %p749_p4 = pnand %p748_p3, %p744_p0 }
  0x1c   : > { %752 = shalt.err (!%p749_p4)
}
  0x1d   : > { %668 = dma.hbm_to_vmem [thread:$0]  (!%p948_p8), %s147_s4, 512, %s149_s30, %s136_s6  }
  0x1e   : > { %p972_p5 = pnand %p644_p9, %p172_p10  ;;  %s642_s21 = sshll.u32 %s939_s23, 2 }
  0x1f   : > { %s643_s24 = sshll.u32 %s868_s15, 2  ;;  %s159_s28 = scalar_lea.vmem [#allocation6], %s642_s21 }
  0x20   : > { %s163_s27 = scalar_lea.hbm %s1173_s1, %s643_s24  ;;  %s167_s29 = sshll.u32 %s159_s28, 4  ;;  %s168_s29 = int_to_ptr.vmem [resolvable:$true] %s167_s29 }
  0x21   : > { %s165_s7 = sshll.u32 %s163_s27, 4  ;;  %s156_s8 = scalar_lea.sflag [#allocation7], %s939_s23  ;;  %s166_s7 = int_to_ptr.hbm [resolvable:$true] %s165_s7 }
  0x22   : > { %s768_s9 = sshra.s32 %s166_s7, 4  ;;  %s775_s6 = scalar_lea.hbm %s1173_s1, 20  ;;  %s769_s9 = int_to_ptr.hbm [resolvable:$true] %s768_s9 }
  0x23   : > { %s770_s30 = scalar_lea.hbm %s769_s9, 4  ;;  %p776_p11 = scmp.lt.s32.totalorder %s769_s9, %s1173_s1 }
  0x24   : > { %p771_p6 = scmp.ne.s32.totalorder %s769_s9, %s770_s30  ;;  %p777_p13 = scmp.lt.s32.totalorder %s775_s6, %s770_s30 }
  0x26   : > { %p773_p9 = pnand %p771_p6, %p742_p12  ;;  %p778_p0 = por %p777_p13, %p776_p11 }
  0x28   : > { %p774_p10 = pneg %p773_p9 }
  0x2a   : > { %p779_p1 = pnand %p778_p0, %p774_p10 }
  0x2c   : > { %782 = shalt.err (!%p779_p1)
}
  0x2d   : > { %671 = dma.hbm_to_vmem [thread:$0]  (!%p948_p8), %s166_s7, 64, %s168_s29, %s156_s8  }
  0x2e   : > { %176 = sbr.rel (%p972_p5) target bundleno = 412 (0x19c), region = 32  ;;  %s178_s23 = sand.u32 (!%p972_p5), 1, %s860_s13  }
  0x2f   : > { %s645_s12 = sshll.u32 (!%p972_p5), %s178_s23, 5  ;;  %s179_s18 = scalar_lea.sflag (!%p972_p5), [#allocation4], %s178_s23 }
  0x30   : > { %s182_s21 = scalar_lea.vmem (!%p972_p5), [#allocation3], %s645_s12 }
  0x33   : > { %843 = dma.done.wait (%p934_p7), %s179_s18, 512  }
  0x34   : > { %845 = vsyncadd (%p934_p7), %s179_s18, 4294966784  ;;  %s646_s24 = sshll.u32 %s178_s23, 2  ;;  %s189_s25 = scalar_lea.sflag [#allocation7], %s178_s23 }
  0x35   : > { %s1000_s26 = scalar_lea.vmem [#allocation6], %s646_s24 }
  0x36   : > { %847 = dma.done.wait (%p934_p7), %s189_s25, 64  }
  0x37   : > { %849 = vsyncadd (%p934_p7), %s189_s25, 4294967232  ;;  %p647_p8 = scmp.ne.s32.totalorder %s913_s16, 0 }
  0x39   : > { %221 = sbr.rel (%p647_p8) target bundleno = 66 (0x42), region = 44 }
  0x3e   : > { %v222_v0 = vlaneseq  ;;  %v870_v1 = vmov 0.0  }
  0x40   : > { %vm224_vm0 = vcmp.lt.s32.totalorder %v222_v0, 512 }
  0x41   : > { %226 = vst.msk [vmem:[#allocation2] sm:$0xf] %vm224_vm0, %v870_v1 }
  0x42 PF: > { %v232_v2 = vld [vmem:[%s1174_s2] sm:$0x1f]  ;;  %v871_v3 = vmov 0   ;;  %v228_v5 = vld [vmem:[%s182_s21 + $0x8] sm:$0x1f]  ;;  %vm243_vm1 = vcmask 1044480  }
  0x43   : > { %711 = vset.pattern.permute.xlu0 %v871_v3  ;;  %v227_v4 = vld [vmem:[%s182_s21] sm:$0x1f]  ;;  %v229_v6 = vld [vmem:[%s182_s21 + $0x10] sm:$0x1f]  ;;  %v230_v7 = vld [vmem:[%s182_s21 + $0x18] sm:$0x1f] }
  0x44   : > { %346 = vperm.xlu0 %711, %v232_v2   ;;  %v244_v8 = vsel %vm243_vm1, %v227_v4, -inf  ;;  %v251_v9 = vsel %vm243_vm1, %v228_v5, -inf  ;;  %v258_v10 = vsel %vm243_vm1, %v229_v6, -inf  ;;  %v265_v11 = vsel %vm243_vm1, %v230_v7, -inf  ;;  %s648_s22 = sshll.u32 %s913_s16, 9  ;;  %p649_p7 = scmp.ne.s32.totalorder %s913_s16, 4 }
  0x45   : > { %v245_v12 = vrot.slane %v244_v8, 4  ;;  %v252_v13 = vrot.slane %v251_v9, 4  ;;  %v259_v14 = vrot.slane %v258_v10, 4  ;;  %v266_v15 = vrot.slane %v265_v11, 4 }
  0x47   : > { %v246_v16 = vmax.f32 %v244_v8, %v245_v12  ;;  %v253_v17 = vmax.f32 %v251_v9, %v252_v13  ;;  %v260_v18 = vmax.f32 %v258_v10, %v259_v14  ;;  %v267_v19 = vmax.f32 %v265_v11, %v266_v15 }
  0x49   : > { %v247_v20 = vrot.slane %v246_v16, 2  ;;  %v254_v21 = vrot.slane %v253_v17, 2  ;;  %v261_v22 = vrot.slane %v260_v18, 2  ;;  %v268_v23 = vrot.slane %v267_v19, 2 }
  0x4b   : > { %v248_v24 = vmax.f32 %v246_v16, %v247_v20  ;;  %v255_v25 = vmax.f32 %v253_v17, %v254_v21  ;;  %v262_v26 = vmax.f32 %v260_v18, %v261_v22  ;;  %v269_v27 = vmax.f32 %v267_v19, %v268_v23 }
  0x4d   : > { %v249_v28 = vrot.slane %v248_v24, 1  ;;  %v256_v29 = vrot.slane %v255_v25, 1  ;;  %v263_v30 = vrot.slane %v262_v26, 1  ;;  %v270_v31 = vrot.slane %v269_v27, 1 }
  0x4f   : > { %v250_v32 = vmax.f32 %v248_v24, %v249_v28  ;;  %v257_v33 = vmax.f32 %v255_v25, %v256_v29  ;;  %v264_v34 = vmax.f32 %v262_v26, %v263_v30  ;;  %v271_v35 = vmax.f32 %v269_v27, %v270_v31 }
  0x51   : > { %v272_v36 = vsub.f32 %v227_v4, %v250_v32  ;;  %v273_v37 = vsub.f32 %v228_v5, %v257_v33  ;;  %v274_v38 = vsub.f32 %v229_v6, %v264_v34  ;;  %v275_v39 = vsub.f32 %v230_v7, %v271_v35  ;;  %v231_v6 = vld [vmem:[%s1000_s26] sm:$0xf] }
  0x52   : > { %v233_v4 = vlaneseq  ;;  %v235_v10 = vperm.slane %v231_v6, 0  ;;  %v236_v11 = vperm.slane %v231_v6, 1  ;;  %v237_v12 = vperm.slane %v231_v6, 2 }
  0x53   : > { %v276_v40 = vmul.f32 1.442695, %v272_v36  ;;  %v278_v41 = vmul.f32 1.442695, %v273_v37  ;;  %v280_v42 = vmul.f32 1.442695, %v274_v38 }
  0x54   : > { %v282_v43 = vmul.f32 1.442695, %v275_v39  ;;  %v234_v9 = vshrl.u32 %v233_v4, 7  ;;  %v238_v13 = vperm.slane %v231_v6, 3 }
  0x55   : > { %712 = vpow2.f32 %v276_v40 }
  0x56   : > { %714 = vpow2.f32 %v278_v41  ;;  %vm1022_vm2 = vcmp.eq.s32.totalorder %v234_v9, %v235_v10  ;;  %vm1026_vm3 = vcmp.eq.s32.totalorder %v234_v9, %v236_v11  ;;  %vm1030_vm4 = vcmp.eq.s32.totalorder %v234_v9, %v237_v12 }
  0x57   : > { %716 = vpow2.f32 %v280_v42  ;;  %vm1036_vm5 = vcmp.eq.s32.totalorder %v234_v9, %v238_v13 }
  0x58   : > { %718 = vpow2.f32 %v282_v43 }
  0x5b   : > { %v713_v44 = vpop.eup %712 }
  0x5c   : > { %v715_v45 = vpop.eup %714  ;;  %v284_v46 = vsel %vm243_vm1, %v713_v44, 0.0  ;;  %v312_v20 = vsel %vm1022_vm2, %v713_v44, 0.0 }
  0x5d   : > { %v717_v47 = vpop.eup %716  ;;  %v285_v48 = vrot.slane %v284_v46, 4  ;;  %v291_v49 = vsel %vm243_vm1, %v715_v45, 0.0  ;;  %v313_v21 = vsel %vm1026_vm3, %v715_v45, 0.0  ;;  %v316_v26 = vsel %vm243_vm1, %v312_v20, 0.0 }
  0x5e   : > { %v719_v50 = vpop.eup %718  ;;  %v292_v51 = vrot.slane %v291_v49, 4  ;;  %v298_v52 = vsel %vm243_vm1, %v717_v47, 0.0  ;;  %v314_v23 = vsel %vm1030_vm4, %v717_v47, 0.0  ;;  %v323_v27 = vsel %vm243_vm1, %v313_v21, 0.0 }
  0x5f   : > { %v286_v53 = vadd.f32 %v285_v48, %v284_v46  ;;  %v299_v54 = vrot.slane %v298_v52, 4  ;;  %v305_v55 = vsel %vm243_vm1, %v719_v50, 0.0  ;;  %v315_v24 = vsel %vm1036_vm5, %v719_v50, 0.0 }
  0x60   : > { %v293_v56 = vadd.f32 %v292_v51, %v291_v49  ;;  %v306_v57 = vrot.slane %v305_v55, 4  ;;  %v330_v28 = vsel %vm243_vm1, %v314_v23, 0.0  ;;  %v337_v29 = vsel %vm243_vm1, %v315_v24, 0.0 }
  0x61   : > { %v287_v58 = vrot.slane %v286_v53, 2  ;;  %v300_v59 = vadd.f32 %v299_v54, %v298_v52  ;;  %v317_v32 = vrot.slane %v316_v26, 4  ;;  %v324_v33 = vrot.slane %v323_v27, 4 }
  0x62   : > { %v294_v60 = vrot.slane %v293_v56, 2  ;;  %v307_v61 = vadd.f32 %v306_v57, %v305_v55  ;;  %v331_v34 = vrot.slane %v330_v28, 4  ;;  %v338_v35 = vrot.slane %v337_v29, 4 }
  0x63   : > { %v288_v62 = vadd.f32 %v287_v58, %v286_v53  ;;  %v301_v63 = vrot.slane %v300_v59, 2  ;;  %v318_v38 = vadd.f32 %v317_v32, %v316_v26  ;;  %v325_v39 = vadd.f32 %v324_v33, %v323_v27 }
  0x64   : > { %v295_v0 = vadd.f32 %v294_v60, %v293_v56  ;;  %v308_v1 = vrot.slane %v307_v61, 2  ;;  %v332_v40 = vadd.f32 %v331_v34, %v330_v28  ;;  %v339_v41 = vadd.f32 %v338_v35, %v337_v29 }
  0x65   : > { %v289_v2 = vrot.slane %v288_v62, 1  ;;  %v302_v3 = vadd.f32 %v301_v63, %v300_v59  ;;  %v319_v45 = vrot.slane %v318_v38, 2  ;;  %v326_v46 = vrot.slane %v325_v39, 2 }
  0x66   : > { %v296_v5 = vrot.slane %v295_v0, 1  ;;  %v309_v8 = vadd.f32 %v308_v1, %v307_v61  ;;  %v333_v47 = vrot.slane %v332_v40, 2  ;;  %v340_v49 = vrot.slane %v339_v41, 2 }
  0x67   : > { %v1019_v7 = vadd.f32 %v289_v2, %v288_v62  ;;  %v303_v14 = vrot.slane %v302_v3, 1  ;;  %v320_v54 = vadd.f32 %v319_v45, %v318_v38  ;;  %v327_v55 = vadd.f32 %v326_v46, %v325_v39 }
  0x68   : > { %v1034_v18 = vadd.f32 %v296_v5, %v295_v0  ;;  %v310_v22 = vrot.slane %v309_v8, 1  ;;  %v334_v56 = vadd.f32 %v333_v47, %v332_v40  ;;  %v341_v58 = vadd.f32 %v340_v49, %v339_v41 }
  0x69   : > { %720 = vrcp.f32 %v1019_v7  ;;  %v1049_v25 = vadd.f32 %v303_v14, %v302_v3  ;;  %v392_v59 = vand.u32 2147483648, %v1019_v7  ;;  %vm386_vm6 = vweird.f32 %v1019_v7 }
  0x6a   : > { %722 = vrcp.f32 %v1034_v18  ;;  %v1056_v30 = vadd.f32 %v310_v22, %v309_v8  ;;  %v407_v61 = vand.u32 2147483648, %v1034_v18  ;;  %v390_v1 = vand.u32 2147483647, %v1019_v7 }
  0x6b   : > { %724 = vrcp.f32 %v1049_v25  ;;  %vm401_vm8 = vweird.f32 %v1034_v18  ;;  %v405_v2 = vand.u32 2147483647, %v1034_v18  ;;  %vm416_vm10 = vweird.f32 %v1049_v25 }
  0x6c   : > { %726 = vrcp.f32 %v1056_v30  ;;  %vm431_vm13 = vweird.f32 %v1056_v30  ;;  %v321_v8 = vrot.slane %v320_v54, 1  ;;  %v420_v11 = vand.u32 2147483647, %v1049_v25 }
  0x6d   : > { %v437_v12 = vand.u32 2147483648, %v1056_v30  ;;  %v328_v13 = vrot.slane %v327_v55, 1  ;;  %v393_v14 = vor.u32 1.1754944e-38, %v392_v59  ;;  %v435_v21 = vand.u32 2147483647, %v1056_v30 }
  0x6e   : > { %v335_v22 = vrot.slane %v334_v56, 1  ;;  %v408_v24 = vor.u32 1.1754944e-38, %v407_v61  ;;  %v342_v26 = vrot.slane %v341_v58, 1  ;;  %v322_v29 = vadd.f32 %v321_v8, %v320_v54 }
  0x6f   : > { %v1058_v31 = vpop.eup %720  ;;  %v438_v32 = vor.u32 1.1754944e-38, %v437_v12  ;;  %v329_v33 = vadd.f32 %v328_v13, %v327_v55  ;;  %v479_v13 = vstv %s648_s22 }
  0x70   : > { %v382_v36 = vmul.f32 %v1058_v31, %v1019_v7  ;;  %v1064_v37 = vpop.eup %722  ;;  %vm387_vm7 = vweird.f32 %v1058_v31  ;;  %v422_v7 = vand.u32 2147483648, %v1049_v25  ;;  %v336_v35 = vadd.f32 %v335_v22, %v334_v56 }
  0x71   : > { %v1066_v42 = vpop.eup %724  ;;  %v397_v44 = vmul.f32 %v1064_v37, %v1034_v18  ;;  %vm402_vm9 = vweird.f32 %v1064_v37  ;;  %vm1091_vm12 = vmor %vm386_vm6, %vm387_vm7  ;;  %vm391_vm6 = vcmp.eq.f32.partialorder %v390_v1, 8.507059e+37  ;;  %v343_v38 = vadd.f32 %v342_v26, %v341_v58 }
  0x72   : > { %v383_v43 = vsub.f32 1.0, %v382_v36  ;;  %v1070_v48 = vpop.eup %726  ;;  %v412_v51 = vmul.f32 %v1066_v42, %v1049_v25  ;;  %vm417_vm11 = vweird.f32 %v1066_v42  ;;  %vm1099_vm15 = vmor %vm401_vm8, %vm402_vm9  ;;  %vm406_vm8 = vcmp.eq.f32.partialorder %v405_v2, 8.507059e+37 }
  0x73   : > { %v398_v50 = vsub.f32 1.0, %v397_v44  ;;  %v427_v57 = vmul.f32 %v1070_v48, %v1056_v30  ;;  %vm432_vm14 = vweird.f32 %v1070_v48  ;;  %vm1108_vm0 = vmor %vm416_vm10, %vm417_vm11  ;;  %v423_v28 = vor.u32 1.1754944e-38, %v422_v7 }
  0x74   : > { %v384_v52 = vmul.f32 %v1058_v31, %v383_v43  ;;  %v413_v53 = vsub.f32 1.0, %v412_v51  ;;  %vm1121_vm7 = vmor %vm431_vm13, %vm432_vm14  ;;  %vm421_vm9 = vcmp.eq.f32.partialorder %v420_v11, 8.507059e+37  ;;  %vm436_vm10 = vcmp.eq.f32.partialorder %v435_v21, 8.507059e+37 }
  0x75   : > { %v399_v60 = vmul.f32 %v1064_v37, %v398_v50  ;;  %v428_v63 = vsub.f32 1.0, %v427_v57  ;;  %vm502_vm11 = vcmask 1042434   ;;  %vm510_vm13 = vcmp.lt.s32.totalorder %v233_v4, 512 }
  0x76   : > { %v414_v62 = vmul.f32 %v1066_v42, %v413_v53  ;;  %v385_v0 = vadd.f32 %v1058_v31, %v384_v52  ;;  %v474_v52 = vand.u32 127, %v233_v4 }
  0x77   : > { %v429_v3 = vmul.f32 %v1070_v48, %v428_v63  ;;  %v400_v6 = vadd.f32 %v1064_v37, %v399_v60 }
  0x78   : > { %v415_v10 = vadd.f32 %v1066_v42, %v414_v62  ;;  %v389_v23 = vsel %vm1091_vm12, %v1058_v31, %v385_v0  ;;  %v475_v2 = vadd.s32 128, %v474_v52  ;;  %v476_v19 = vadd.s32 256, %v474_v52 }
  0x79   : > { %v430_v20 = vadd.f32 %v1070_v48, %v429_v3  ;;  %v404_v27 = vsel %vm1099_vm15, %v1064_v37, %v400_v6  ;;  %v394_v30 = vsel %vm391_vm6, %v393_v14, %v389_v23  ;;  %v477_v3 = vadd.s32 384, %v474_v52 }
  0x7a   : > { %v419_v31 = vsel %vm1108_vm0, %v1066_v42, %v415_v10  ;;  %v409_v36 = vsel %vm406_vm8, %v408_v24, %v404_v27  ;;  %v395_v39 = vmul.f32 %v394_v30, %v322_v29  ;;  %v482_v30 = vadd.s32 %v479_v13, %v476_v19 }
  0x7b   : > { %v434_v34 = vsel %vm1121_vm7, %v1070_v48, %v430_v20  ;;  %v424_v37 = vsel %vm421_vm9, %v423_v28, %v419_v31  ;;  %v410_v41 = vmul.f32 %v409_v36, %v329_v33  ;;  %v481_v33 = vadd.s32 %v479_v13, %v475_v2 }
  0x7c   : > { %v439_v40 = vsel %vm436_vm10, %v438_v32, %v434_v34  ;;  %v425_v43 = vmul.f32 %v424_v37, %v336_v35  ;;  %v453_v45 = vadd.f32 1e-07, %v395_v39  ;;  %v441_v49 = vsub.f32 1.0, %v395_v39 }
  0x7d   : > { %v440_v44 = vmul.f32 %v439_v40, %v343_v38  ;;  %v454_v42 = vadd.f32 1e-07, %v410_v41  ;;  %v442_v50 = vsub.f32 1.0, %v410_v41  ;;  %v483_v41 = vadd.s32 %v479_v13, %v477_v3 }
  0x7e   : > { %v455_v46 = vadd.f32 1e-07, %v425_v43  ;;  %728 = vlog2.f32 %v453_v45  ;;  %v445_v51 = vmul.f32 %v441_v49, %v441_v49  ;;  %v443_v1 = vsub.f32 1.0, %v425_v43 }
  0x7f   : > { %v456_v47 = vadd.f32 1e-07, %v440_v44  ;;  %730 = vlog2.f32 %v454_v42  ;;  %v444_v10 = vsub.f32 1.0, %v440_v44  ;;  %v446_v11 = vmul.f32 %v442_v50, %v442_v50 }
  0x80   : > { %732 = vlog2.f32 %v455_v46  ;;  %v447_v22 = vmul.f32 %v443_v1, %v443_v1  ;;  %v480_v46 = vadd.s32 %v479_v13, %v474_v52  ;;  %vm504_vm12 = vcmask 1041408  }
  0x81   : > { %734 = vlog2.f32 %v456_v47  ;;  %v448_v31 = vmul.f32 %v444_v10, %v444_v10 }
  0x84   : > { %v729_v57 = vpop.eup %728 }
  0x85   : > { %v731_v15 = vpop.eup %730  ;;  %v458_v12 = vmul.f32 0.6931472, %v729_v57 }
  0x86   : > { %v733_v17 = vpop.eup %732  ;;  %v460_v23 = vmul.f32 0.6931472, %v731_v15  ;;  %v492_v15 = vld [vmem:[#allocation2] sm:$0xf] }
  0x87   : > { %v735_v5 = vpop.eup %734  ;;  %v462_v24 = vmul.f32 0.6931472, %v733_v17  ;;  %v465_v32 = vsub.f32 0.0, %v458_v12 }
  0x88   : > { %v464_v25 = vmul.f32 0.6931472, %v735_v5  ;;  %v466_v37 = vsub.f32 0.0, %v460_v23 }
  0x89   : > { %v467_v39 = vsub.f32 0.0, %v462_v24 }
  0x8a   : > { %v468_v40 = vsub.f32 0.0, %v464_v25 }
  0xb6   : > { %v347_v48 = vpop.permute.xlu0 %346 }
  0xb7   : > { %v349_v53 = vsel %vm1022_vm2, %v347_v48, 0.0  ;;  %v350_v54 = vsel %vm1026_vm3, %v347_v48, 0.0  ;;  %v351_v55 = vsel %vm1030_vm4, %v347_v48, 0.0  ;;  %v352_v56 = vsel %vm1036_vm5, %v347_v48, 0.0 }
  0xb8   : > { %v353_v58 = vsel %vm243_vm1, %v349_v53, 0.0  ;;  %v360_v59 = vsel %vm243_vm1, %v350_v54, 0.0  ;;  %v367_v60 = vsel %vm243_vm1, %v351_v55, 0.0  ;;  %v374_v61 = vsel %vm243_vm1, %v352_v56, 0.0 }
  0xb9   : > { %v354_v62 = vrot.slane %v353_v58, 4  ;;  %v361_v63 = vrot.slane %v360_v59, 4  ;;  %v368_v16 = vrot.slane %v367_v60, 4  ;;  %v375_v0 = vrot.slane %v374_v61, 4 }
  0xba   : > { %vm485_vm1 = vcmp.lt.s32.totalorder %v481_v33, 2500  ;;  %vm486_vm2 = vcmp.lt.s32.totalorder %v482_v30, 2500  ;;  %vm487_vm3 = vcmp.lt.s32.totalorder %v483_v41, 2500  ;;  %vm484_vm4 = vcmp.lt.s32.totalorder %v480_v46, 2500 }
  0xbb   : > { %v355_v6 = vadd.f32 %v354_v62, %v353_v58  ;;  %v362_v7 = vadd.f32 %v361_v63, %v360_v59  ;;  %v369_v8 = vadd.f32 %v368_v16, %v367_v60  ;;  %v376_v9 = vadd.f32 %v375_v0, %v374_v61 }
  0xbc   : > { %vm500_vm5 = vcmask 1040384  }
  0xbd   : > { %v356_v14 = vrot.slane %v355_v6, 2  ;;  %v363_v18 = vrot.slane %v362_v7, 2  ;;  %v370_v20 = vrot.slane %v369_v8, 2  ;;  %v377_v21 = vrot.slane %v376_v9, 2 }
  0xbf   : > { %v357_v26 = vadd.f32 %v356_v14, %v355_v6  ;;  %v364_v27 = vadd.f32 %v363_v18, %v362_v7  ;;  %v371_v28 = vadd.f32 %v370_v20, %v369_v8  ;;  %v378_v29 = vadd.f32 %v377_v21, %v376_v9 }
  0xc1   : > { %v358_v34 = vrot.slane %v357_v26, 1  ;;  %v365_v35 = vrot.slane %v364_v27, 1  ;;  %v372_v36 = vrot.slane %v371_v28, 1  ;;  %v379_v38 = vrot.slane %v378_v29, 1 }
  0xc3   : > { %v359_v43 = vadd.f32 %v358_v34, %v357_v26  ;;  %v366_v44 = vadd.f32 %v365_v35, %v364_v27  ;;  %v373_v45 = vadd.f32 %v372_v36, %v371_v28  ;;  %v380_v42 = vadd.f32 %v379_v38, %v378_v29 }
  0xc5   : > { %v449_v47 = vmul.f32 %v445_v51, %v359_v43  ;;  %v450_v49 = vmul.f32 %v446_v11, %v366_v44  ;;  %v451_v48 = vmul.f32 %v447_v22, %v373_v45  ;;  %v452_v50 = vmul.f32 %v448_v31, %v380_v42 }
  0xc7   : > { %v469_v53 = vmul.f32 %v465_v32, %v449_v47  ;;  %v470_v54 = vmul.f32 %v466_v37, %v450_v49  ;;  %v471_v55 = vmul.f32 %v467_v39, %v451_v48  ;;  %v472_v56 = vmul.f32 %v468_v40, %v452_v50 }
  0xc9   : > { %v489_v57 = vsel %vm485_vm1, %v470_v54, 0.0  ;;  %v490_v58 = vsel %vm486_vm2, %v471_v55, 0.0  ;;  %v491_v59 = vsel %vm487_vm3, %v472_v56, 0.0  ;;  %v488_v51 = vsel %vm484_vm4, %v469_v53, 0.0 }
  0xca   : > { %v497_v60 = vrot.slane %v489_v57, 7  ;;  %v498_v61 = vrot.slane %v490_v58, 6  ;;  %v499_v52 = vrot.slane %v491_v59, 5 }
  0xcc   : > { %v501_v62 = vsel %vm500_vm5, %v488_v51, %v497_v60  ;;  %v503_v63 = vsel %vm502_vm11, %v498_v61, %v499_v52  ;;  %516 = sbr.rel (%p649_p7) target bundleno = 407 (0x197), region = 48 }
  0xcd   : > { %v505_v16 = vsel %vm504_vm12, %v501_v62, %v503_v63 }
  0xce   : > { %v507_v0 = vadd.f32 %v505_v16, %v492_v15 }
  0xd0   : > { %512 = vst.msk [vmem:[#allocation2] sm:$0xf] %vm510_vm13, %v507_v0 }
  0xd1   : > { %v872_v22 = vmov 2500.0   ;;  %vm552_vm15 = vcmask 0  }
  0xd2   : > { %736 = vrcp.f32 %v872_v22 }
  0xd7   : > { %v517_v17 = vld [vmem:[#allocation2] sm:$0xf] }
  0xd8   : > { %v519_v1 = vperm.slane %v517_v17, 0  ;;  %v520_v2 = vperm.slane %v517_v17, 1  ;;  %v521_v19 = vperm.slane %v517_v17, 2  ;;  %v522_v3 = vperm.slane %v517_v17, 3  ;;  %v737_v23 = vpop.eup %736 }
  0xd9   : > { %v545_v24 = vmul.f32 2500.0, %v737_v23  ;;  %vm549_vm14 = vweird.f32 %v737_v23 }
  0xda   : > { %v527_v5 = vsel %vm500_vm5, %v519_v1, 0.0  ;;  %v528_v6 = vsel %vm500_vm5, %v520_v2, 0.0  ;;  %v530_v7 = vsel %vm500_vm5, %v521_v19, 0.0  ;;  %v532_v9 = vsel %vm500_vm5, %v522_v3, 0.0 }
  0xdb   : > { %v529_v8 = vadd.f32 %v528_v6, %v527_v5  ;;  %v546_v25 = vsub.f32 1.0, %v545_v24 }
  0xdd   : > { %v531_v4 = vadd.f32 %v530_v7, %v529_v8  ;;  %v547_v26 = vmul.f32 %v737_v23, %v546_v25 }
  0xdf   : > { %v533_v10 = vadd.f32 %v532_v9, %v531_v4  ;;  %v548_v27 = vadd.f32 %v737_v23, %v547_v26 }
  0xe1   : > { %534 = vadd.xlane.f32.xlu0 %v533_v10  ;;  %v550_v28 = vsel %vm549_vm14, %v737_v23, %v548_v27 }
 0x154   : > { %v535_v11 = vpop.xlane.xlu0 %534 }
 0x155   : > { %v536_v12 = vrot.slane %v535_v11, 4 }
 0x157   : > { %v537_v13 = vadd.f32 %v536_v12, %v535_v11 }
 0x159   : > { %v538_v14 = vrot.slane %v537_v13, 2 }
 0x15b   : > { %v539_v18 = vadd.f32 %v538_v14, %v537_v13 }
 0x15d   : > { %v540_v20 = vrot.slane %v539_v18, 1 }
 0x15f   : > { %v541_v21 = vadd.f32 %v540_v20, %v539_v18 }
 0x161   : > { %655 = vpush %v541_v21 }
 0x192   : > { %s656_s27 = spop %655 }
 0x193   : > { %v543_v29 = vstv %s656_s27 }
 0x194   : > { %v551_v31 = vmul.f32 %v550_v28, %v543_v29 }
 0x196   : > { %553 = vst.msk [vmem:[#allocation8] sm:$0x1] %vm552_vm15, %v551_v31 }
 0x197 PF: > { %p673_p12 = scmp.eq.s32.totalorder %s913_s16, 4  ;;  %s873_s28 = smov [#allocation8]  }
 0x198   : > { %s560_s29 = sshll.u32 %s873_s28, 4  ;;  %s562_s9 = sshll.u32 %s1175_s3, 4  ;;  %s561_s29 = int_to_ptr.vmem [resolvable:$true] %s560_s29  ;;  %s563_s9 = int_to_ptr.hbm [resolvable:$true] %s562_s9 }
 0x199   : > { %662 = dma.vmem_to_hbm [thread:$0]  (%p673_p12), %s561_s29, 16, %s563_s9, [#allocation5]  }
 0x19a   : > { %851 = dma.done.wait (%p673_p12), [#allocation5], 16  }
 0x19b   : > { %853 = vsyncadd (%p673_p12), [#allocation5], 4294967280 }
 0x19c PF: > { %p17_p2 = scmp.ge.s32.totalorder %s916_s17, 7   ;;  %s1196_s12 = smov %s860_s13 }
 0x19d   : > { %s1197_s13 = smov %s864_s14  ;;  %s1198_s14 = smov %s926_s20 }
 0x19e   : > { %s1199_s15 = smov %s916_s17  ;;  %19 = sbr.rel (!%p17_p2) target bundleno = 6 (0x6), region = 90 }
 0x1a3   :  { %576 = vsyncpa [#allocation4], 1 }
 0x1a4   :  { %578 = vsyncpa [#allocation4 + $0x1], 1 }
 0x1a5   :  { %579 = vsyncpa [#allocation7], 1 }
 0x1a6   :  { %581 = vsyncpa [#allocation7 + $0x1], 1 }
 0x1a7   :  { %582 = vsyncpa [#allocation5], 1 }
 0x1a8   :  { %584 = vsyncpa [#allocation5 + $0x1], 1 }

</bundles_post_ra>
